<compile_context>
chip_gen: v6e
topology: v6e:2x2x1
jax: 0.10.0
libtpu: 0.0.40
codegen_flags: <defaults>
</compile_context>

<pallas_src>
import jax
import jax.numpy as jnp
from jax.experimental import pallas as pl
from jax.experimental.pallas import tpu as pltpu


def _intensity_kernel(factor_ref, x_ref, o_ref):
    # factor_ref: (TB, 1)  per-batch multiplicative factor
    # x_ref/o_ref: (TB, TD) tiles; lane-broadcast multiply on the VPU.
    o_ref[...] = x_ref[...] * factor_ref[...]


def _pick_tiles(B, D, itemsize, target_block_bytes):
    """Choose (TB, TD).

    Second-minor block dim is a multiple of the dtype sublane packing (or the
    full batch dim); minor block dim is a multiple of 128 (or the full D).
    Edge blocks may be ragged -- Pallas masks them, which is correct for this
    pure elementwise op (no in-kernel reductions).
    """
    sub = max(8, 32 // itemsize)                   # f32: 8, bf16: 16, 8-bit: 32
    row_bytes = D * itemsize
    if B * row_bytes <= target_block_bytes:
        return B, D                                # whole array in one block
    if sub * row_bytes <= target_block_bytes:
        tb = (target_block_bytes // row_bytes) // sub * sub
        return max(sub, tb), D                     # full rows, tile batch only
    tb = B if B < sub else sub                     # rows too big: tile lanes too
    td = (target_block_bytes // (tb * itemsize)) // 128 * 128
    return tb, max(128, td)


def intensity(x, key, scale=0.1, *, target_block_bytes=4 << 20, donate_x=False):
    """Pallas implementation of Intensity.forward.

    x:   (B, C, H, W) array (NCHW, same as the PyTorch module)
    key: jax PRNG key used to draw the per-batch gaussian noise
    """
    B, C, H, W = x.shape
    D = C * H * W
    dtype = x.dtype
    itemsize = jnp.dtype(dtype).itemsize

    # --- per-batch noise factor (O(B) work, plain JAX) ----------------------
    r = jax.random.normal(key, (B, 1), dtype=jnp.float32)
    factor = (1.0 + scale * jnp.clip(r, -2.0, 2.0)).astype(dtype)

    # --- lane-dense slab (metadata-only reshape, no HBM traffic) ------------
    x2 = x.reshape(B, D)

    TB, TD = _pick_tiles(B, D, itemsize, target_block_bytes)
    nb, nd = pl.cdiv(B, TB), pl.cdiv(D, TD)

    # Longer axis first so the megacore-sharded axis has >=2 steps (v7x).
    # The factor index_map depends only on the batch grid index either way.
    if nd > nb:
        grid = (nd, nb)
        x_map = lambda j, i: (i, j)
        f_map = lambda j, i: (i, 0)
    else:
        grid = (nb, nd)
        x_map = lambda i, j: (i, j)
        f_map = lambda i, j: (i, 0)

    extra = {}
    if donate_x:
        # inputs are (factor, x2): alias x2 (index 1) to the single output.
        extra["input_output_aliases"] = {1: 0}

    out2 = pl.pallas_call(
        _intensity_kernel,
        out_shape=jax.ShapeDtypeStruct((B, D), dtype),
        grid=grid,
        in_specs=[
            pl.BlockSpec((TB, 1), f_map),      # per-batch factor
            pl.BlockSpec((TB, TD), x_map),     # x tile
        ],
        out_specs=pl.BlockSpec((TB, TD), x_map),
        compiler_params=pltpu.CompilerParams(
            dimension_semantics=("parallel", "parallel"),
            vmem_limit_bytes=48 << 20,
        ),
        cost_estimate=pl.CostEstimate(
            flops=B * D,
            bytes_accessed=2 * B * D * itemsize + B * itemsize,
            transcendentals=0,
        ),
        **extra,
    )(factor, x2)

    return out2.reshape(B, C, H, W)


if __name__ == "__main__":
    key = jax.random.PRNGKey(0)
    kx, knoise, kx2 = jax.random.split(key, 3)
    scale = 0.1

    # Small example consistent with the module (batch=2, channels=4, 16x16).
    B, C, H, W = 2, 4, 16, 16
    x = jax.random.normal(kx, (B, C, H, W), dtype=jnp.float32)
    out = jax.block_until_ready(intensity(x, knoise, scale=scale))

    # Pure-JAX reference with the same RNG draw as the kernel wrapper.
    r = jnp.clip(jax.random.normal(knoise, (B, 1), dtype=jnp.float32), -2.0, 2.0)
    ref = x * (1.0 + scale * r).reshape(B, 1, 1, 1)
    assert out.shape == (B, C, H, W)
    assert jnp.allclose(out, ref, atol=1e-6, rtol=1e-6)

    # Non-divisible shape + tiny block budget: exercises the ragged grid
    # (masked edge blocks, no wrapper padding) and the reordered grid path.
    B2, C2, H2, W2 = 5, 3, 20, 24
    x2 = jax.random.normal(kx2, (B2, C2, H2, W2), dtype=jnp.float32)
    out2 = jax.block_until_ready(
        intensity(x2, knoise, scale=scale, target_block_bytes=16 << 10))
    r2 = jnp.clip(jax.random.normal(knoise, (B2, 1), dtype=jnp.float32), -2.0, 2.0)
    ref2 = x2 * (1.0 + scale * r2).reshape(B2, 1, 1, 1)
    assert jnp.allclose(out2, ref2, atol=1e-6, rtol=1e-6)

    print("KERNEL_OK")
</pallas_src>

<mosaic_0001>
module attributes {stable_mosaic.version = 11 : i64} {
  func.func @_intensity_kernel(%arg0: i32, %arg1: i32, %arg2: memref<2x1xf32, #tpu.memory_space<vmem>>, %arg3: memref<2x1024xf32, #tpu.memory_space<vmem>>, %arg4: memref<2x1024xf32, #tpu.memory_space<vmem>>) attributes {dimension_semantics = [#tpu.dimension_semantics<parallel>, #tpu.dimension_semantics<parallel>], iteration_bounds = array<i64: 1, 1>, scalar_prefetch = 0 : i64, scratch_operands = 0 : i64, tpu.core_type = #tpu.core_type<tc>, window_params = [{transform_indices = @transform_0, window_bounds = array<i64: 2, 1>}, {transform_indices = @transform_1, window_bounds = array<i64: 2, 1024>}, {transform_indices = @transform_2, window_bounds = array<i64: 2, 1024>}]} {
    %c0 = arith.constant 0 : index
    %c0_0 = arith.constant 0 : index
    %0 = vector.load %arg3[%c0, %c0_0] : memref<2x1024xf32, #tpu.memory_space<vmem>>, vector<2x1024xf32>
    %c0_1 = arith.constant 0 : index
    %c0_2 = arith.constant 0 : index
    %1 = vector.load %arg2[%c0_1, %c0_2] : memref<2x1xf32, #tpu.memory_space<vmem>>, vector<2x1xf32>
    %2 = vector.broadcast %1 : vector<2x1xf32> to vector<2x1024xf32>
    %3 = arith.mulf %0, %2 : vector<2x1024xf32>
    %c0_3 = arith.constant 0 : index
    %c0_4 = arith.constant 0 : index
    %4 = vector.load %arg4[%c0_3, %c0_4] : memref<2x1024xf32, #tpu.memory_space<vmem>>, vector<2x1024xf32>
    tpu.vector_store %arg4[%c0_3, %c0_4], %3 {strides = array<i32>} : memref<2x1024xf32, #tpu.memory_space<vmem>>, vector<2x1024xf32>,
    return
  }
  func.func @transform_0(%arg0: i32, %arg1: i32) -> (i32, i32) {
    %c0_i32 = arith.constant 0 : i32
    %c0_i32_0 = arith.constant 0 : i32
    return %arg0, %c0_i32 : i32, i32
  }
  func.func @transform_1(%arg0: i32, %arg1: i32) -> (i32, i32) {
    %c0_i32 = arith.constant 0 : i32
    return %arg0, %arg1 : i32, i32
  }
  func.func @transform_2(%arg0: i32, %arg1: i32) -> (i32, i32) {
    %c0_i32 = arith.constant 0 : i32
    return %arg0, %arg1 : i32, i32
  }
}

</mosaic_0001>

<bundles_post_ra>
// kernel: tpu_custom_call.1
= control target key start
LH: loop header
LB: loop body
LE: loop exit
PB: predicated region body
PF: predicated region fallthrough
CT: control target
= control target key end

     0   :  { %7 = vsyncpa [#allocation3], 0  ;;  %s135_s0 = inlined_call_operand.vmem [shape: f32[2,1], index: 0, kind: input, shape index: {}]   ;;  %s136_s1 = inlined_call_operand.hbm [shape: f32[2,1024], index: 1, kind: input, shape index: {}]   ;;  %s137_s2 = inlined_call_operand.hbm [shape: f32[2,1024], index: 2, kind: output, shape index: {}]  }
   0x1   :  { %8 = vsyncpa [#allocation4], 0  ;;  %s107_s9 = smov [#allocation2]  }
   0x2   :  { %s17_s10 = sshll.u32 %s107_s9, 4  ;;  %s18_s10 = int_to_ptr.vmem [resolvable:$true] %s17_s10 }
   0x3   :  { %s71_s11 = scalar_lea.vmem %s18_s10, 256  ;;  %p76_p1 = scmp.lt.s32.totalorder %s18_s10, %s18_s10 }
   0x4   :  { %p72_p0 = scmp.ne.s32.totalorder %s18_s10, %s71_s11  ;;  %p77_p2 = scmp.lt.s32.totalorder %s71_s11, %s71_s11 }
   0x6   :  { %p78_p3 = por %p77_p2, %p76_p1 }
   0x8   :  { %p79_p4 = pnand %p78_p3, %p72_p0 }
   0xa   :  { %82 = shalt.err (!%p79_p4)
}
   0xb   :  { %20 = dma.hbm_to_vmem [thread:$0]  %s136_s1, 256, %s18_s10, [#allocation3]  }
   0xc   :  { %103 = dma.done.wait [#allocation3], 256  }
   0xd   :  { %104 = vsyncadd [#allocation3], 4294967040  ;;  %v108_v0 = vmov 0   ;;  %v26_v1 = vld [vmem:[%s135_s0] sm:$0x3]  ;;  %v34_v4 = vlaneseq  ;;  %v25_v10 = vld [vmem:[#allocation2 + $0x8] sm:$0xff] }
   0xe   :  { %62 = vset.pattern.permute.xlu0 %v108_v0  ;;  %v109_v2 = vmov 269488144   ;;  %v24_v9 = vld [vmem:[#allocation2] sm:$0xff]  ;;  %s110_s16 = smov [#allocation5]  }
   0xf   :  { %29 = vperm.xlu0 %62, %v26_v1   ;;  %v32_v3 = vunpack.c.l.s4 %v109_v2  ;;  %v35_v6 = vshrl.u32 %v34_v4, 7  ;;  %s49_s1 = sshll.u32 %s110_s16, 4  ;;  %s50_s1 = int_to_ptr.vmem [resolvable:$true] %s49_s1 }
  0x10   :  { %s83_s17 = scalar_lea.vmem %s50_s1, 256  ;;  %p88_p6 = scmp.lt.s32.totalorder %s50_s1, %s50_s1 }
  0x11   :  { %v33_v5 = vunpack.c.0.s8 %v32_v3  ;;  %p84_p5 = scmp.ne.s32.totalorder %s50_s1, %s83_s17  ;;  %p89_p7 = scmp.lt.s32.totalorder %s83_s17, %s83_s17 }
  0x13   :  { %v36_v7 = vsub.s32 %v33_v5, %v35_v6  ;;  %p90_p8 = por %p89_p7, %p88_p6 }
  0x15   :  { %p91_p9 = pnand %p90_p8, %p84_p5 }
  0x8a   :  { %v30_v8 = vpop.permute.xlu0 %29 }
  0x8b   :  { %v37_v11 = vrot.slane %v30_v8, %v36_v7 }
  0x8d   :  { %v39_v12 = vmul.f32 %v37_v11, %v24_v9  ;;  %v40_v13 = vmul.f32 %v37_v11, %v25_v10 }
  0x8f   :  { %41 = vst [vmem:[#allocation5] sm:$0xff] %v39_v12  ;;  %42 = vst [vmem:[#allocation5 + $0x8] sm:$0xff] %v40_v13 }
  0x90   :  { %94 = shalt.err (!%p91_p9)
}
  0x91   :  { %52 = dma.vmem_to_hbm [thread:$0]  %s50_s1, 256, %s137_s2, [#allocation4]  }
  0x92   :  { %105 = dma.done.wait [#allocation4], 256  }
  0x93   :  { %106 = vsyncadd [#allocation4], 4294967040 }
  0x94   :  { %56 = vsyncpa [#allocation3], 1 }
  0x95   :  { %57 = vsyncpa [#allocation4], 1 }

</bundles_post_ra>
